<compile_context>
chip_gen: v6e
topology: v6e:2x2x1
jax: 0.10.0
libtpu: 0.0.40
codegen_flags: <defaults>
</compile_context>

<pallas_src>
import math
from functools import partial

import jax
import jax.numpy as jnp
from jax.experimental import pallas as pl
from jax.experimental.pallas import tpu as pltpu

F32 = jnp.float32
BF16 = jnp.bfloat16


def _pick_row_tile(m, target=256):
    """Largest row tile <= target that divides m and is a multiple of 8.

    target=256 keeps double-buffered (tile, d_ff) f32 blocks well inside
    v7x's 64 MiB VMEM; v5e/v6e could go larger but 256 is safe everywhere.
    """
    if m <= target:
        return m
    start = target - (target % 8)
    for t in range(start, 7, -8):
        if m % t == 0:
            return t
    return m


# ----------------------------------------------------------------------------
# Pallas kernels
# ----------------------------------------------------------------------------
def _linear_kernel(x_ref, w_ref, b_ref, o_ref, *, act):
    y = jnp.dot(x_ref[...].astype(BF16), w_ref[...].astype(BF16),
                preferred_element_type=F32) + b_ref[...]
    if act == "gelu":
        y = jax.nn.gelu(y, approximate=False)   # exact erf GELU == F.gelu
    elif act == "relu":
        y = jnp.maximum(y, 0.0)
    o_ref[...] = y.astype(o_ref.dtype)


def pallas_linear(x2d, w, b, act=None):
    m, k = x2d.shape
    n = w.shape[1]
    tm = _pick_row_tile(m)
    return pl.pallas_call(
        partial(_linear_kernel, act=act),
        grid=(m // tm,),
        in_specs=[
            pl.BlockSpec((tm, k), lambda i: (i, 0)),
            pl.BlockSpec((k, n), lambda i: (0, 0)),
            pl.BlockSpec((1, n), lambda i: (0, 0)),
        ],
        out_specs=pl.BlockSpec((tm, n), lambda i: (i, 0)),
        out_shape=jax.ShapeDtypeStruct((m, n), F32),
        compiler_params=pltpu.CompilerParams(dimension_semantics=("parallel",)),
    )(x2d, w, b)


def _linear_res_ln_kernel(x_ref, w_ref, b_ref, r_ref, g_ref, e_ref, o_ref):
    # y = LayerNorm(residual + x @ w + b)
    y = jnp.dot(x_ref[...].astype(BF16), w_ref[...].astype(BF16),
                preferred_element_type=F32) + b_ref[...] + r_ref[...]
    mu = jnp.mean(y, axis=-1, keepdims=True)
    var = jnp.mean(jnp.square(y - mu), axis=-1, keepdims=True)
    o_ref[...] = ((y - mu) * jax.lax.rsqrt(var + 1e-5) * g_ref[...]
                  + e_ref[...]).astype(o_ref.dtype)


def pallas_linear_res_ln(x2d, w, b, res2d, g, e):
    m, k = x2d.shape
    n = w.shape[1]
    tm = _pick_row_tile(m)
    return pl.pallas_call(
        _linear_res_ln_kernel,
        grid=(m // tm,),
        in_specs=[
            pl.BlockSpec((tm, k), lambda i: (i, 0)),
            pl.BlockSpec((k, n), lambda i: (0, 0)),
            pl.BlockSpec((1, n), lambda i: (0, 0)),
            pl.BlockSpec((tm, n), lambda i: (i, 0)),
            pl.BlockSpec((1, n), lambda i: (0, 0)),
            pl.BlockSpec((1, n), lambda i: (0, 0)),
        ],
        out_specs=pl.BlockSpec((tm, n), lambda i: (i, 0)),
        out_shape=jax.ShapeDtypeStruct((m, n), F32),
        compiler_params=pltpu.CompilerParams(dimension_semantics=("parallel",)),
    )(x2d, w, b, res2d, g, e)


def _layernorm_kernel(x_ref, g_ref, b_ref, o_ref):
    x = x_ref[...]
    mu = jnp.mean(x, axis=-1, keepdims=True)
    var = jnp.mean(jnp.square(x - mu), axis=-1, keepdims=True)
    o_ref[...] = ((x - mu) * jax.lax.rsqrt(var + 1e-5) * g_ref[...]
                  + b_ref[...]).astype(o_ref.dtype)


def pallas_layernorm(x2d, g, b):
    m, d = x2d.shape
    tm = _pick_row_tile(m)
    return pl.pallas_call(
        _layernorm_kernel,
        grid=(m // tm,),
        in_specs=[
            pl.BlockSpec((tm, d), lambda i: (i, 0)),
            pl.BlockSpec((1, d), lambda i: (0, 0)),
            pl.BlockSpec((1, d), lambda i: (0, 0)),
        ],
        out_specs=pl.BlockSpec((tm, d), lambda i: (i, 0)),
        out_shape=jax.ShapeDtypeStruct((m, d), F32),
        compiler_params=pltpu.CompilerParams(dimension_semantics=("parallel",)),
    )(x2d, g, b)


def _attention_kernel(q_ref, k_ref, v_ref, o_ref, *, n_heads, causal, q_tile):
    # All heads of one (batch, q-tile) block.  1/sqrt(E) is already folded
    # into the query projection, so no per-score scaling here.
    q = q_ref[0]                       # (tq, H*E)
    k = k_ref[0]                       # (S,  H*E)
    v = v_ref[0]                       # (S,  H*Dv)
    tq, s_len = q.shape[0], k.shape[0]
    e = q.shape[1] // n_heads
    dv = v.shape[1] // n_heads

    if causal:
        q0 = pl.program_id(1) * q_tile
        row = q0 + jax.lax.broadcasted_iota(jnp.int32, (tq, s_len), 0)
        col = jax.lax.broadcasted_iota(jnp.int32, (tq, s_len), 1)
        mask_bias = jnp.where(col > row, -jnp.inf, 0.0).astype(F32)

    heads = []
    for h in range(n_heads):
        qh = q[:, h * e:(h + 1) * e].astype(BF16)
        kh = k[:, h * e:(h + 1) * e].astype(BF16)
        vh = v[:, h * dv:(h + 1) * dv].astype(BF16)
        s = jax.lax.dot_general(qh, kh, (((1,), (1,)), ((), ())),
                                preferred_element_type=F32)
        if causal:
            s = s + mask_bias
        m = jnp.max(s, axis=-1, keepdims=True)
        p = jnp.exp(s - m)
        inv = pl.reciprocal(jnp.sum(p, axis=-1, keepdims=True), approx=True)
        a = (p * inv).astype(BF16)
        heads.append(jax.lax.dot_general(a, vh, (((1,), (0,)), ((), ())),
                                         preferred_element_type=F32))
    # lane-dense (tq, H*Dv) output slab, heads concatenated per position
    o_ref[0] = jnp.concatenate(heads, axis=-1).astype(o_ref.dtype)


def pallas_attention(q, k, v, *, n_heads, causal):
    b, l, d = q.shape
    s = k.shape[1]
    dv_total = v.shape[2]
    tq = _pick_row_tile(l, target=128)
    return pl.pallas_call(
        partial(_attention_kernel, n_heads=n_heads, causal=causal, q_tile=tq),
        grid=(b, l // tq),
        in_specs=[
            pl.BlockSpec((1, tq, d), lambda bi, qi: (bi, qi, 0)),
            pl.BlockSpec((1, s, d), lambda bi, qi: (bi, 0, 0)),
            pl.BlockSpec((1, s, dv_total), lambda bi, qi: (bi, 0, 0)),
        ],
        out_specs=pl.BlockSpec((1, tq, dv_total), lambda bi, qi: (bi, qi, 0)),
        out_shape=jax.ShapeDtypeStruct((b, l, dv_total), F32),
        compiler_params=pltpu.CompilerParams(
            dimension_semantics=("parallel", "parallel")),
    )(q, k, v)


def _embed_kernel(xp_ref, pt_ref, w0_ref, w1_ref, w2_ref, b_ref, o_ref):
    # TokenEmbedding: circular Conv1d(k=3) as three shifted matmuls over the
    # circularly padded input, fused with bias + positional + temporal add.
    xp = xp_ref[0]                     # (L+2, C), circular pad done in glue
    l = xp.shape[0] - 2
    y = (jnp.dot(xp[0:l], w0_ref[...], preferred_element_type=F32)
         + jnp.dot(xp[1:l + 1], w1_ref[...], preferred_element_type=F32)
         + jnp.dot(xp[2:l + 2], w2_ref[...], preferred_element_type=F32))
    o_ref[0] = (y + b_ref[...] + pt_ref[0]).astype(o_ref.dtype)


def pallas_embed(xp, pe_temp, w0, w1, w2, b):
    bsz, lp2, c = xp.shape
    l = lp2 - 2
    d = w0.shape[1]
    return pl.pallas_call(
        _embed_kernel,
        grid=(bsz,),
        in_specs=[
            pl.BlockSpec((1, lp2, c), lambda i: (i, 0, 0)),
            pl.BlockSpec((1, l, d), lambda i: (i, 0, 0)),
            pl.BlockSpec((c, d), lambda i: (0, 0)),
            pl.BlockSpec((c, d), lambda i: (0, 0)),
            pl.BlockSpec((c, d), lambda i: (0, 0)),
            pl.BlockSpec((1, d), lambda i: (0, 0)),
        ],
        out_specs=pl.BlockSpec((1, l, d), lambda i: (i, 0, 0)),
        out_shape=jax.ShapeDtypeStruct((bsz, l, d), F32),
        compiler_params=pltpu.CompilerParams(dimension_semantics=("parallel",)),
    )(xp, pe_temp, w0, w1, w2, b)


def _distil_kernel(xp_ref, w0_ref, w1_ref, w2_ref, b_ref,
                   g_ref, e_ref, m_ref, v_ref, o_ref):
    # InformerConvLayer: circular Conv1d(k=3) -> BatchNorm1d(eval) -> ELU
    #                    -> MaxPool1d(kernel=3, stride=2, padding=1), fused.
    xp = xp_ref[0]                     # (L+2, C)
    l = xp.shape[0] - 2
    c = xp.shape[1]
    y = (jnp.dot(xp[0:l], w0_ref[...], preferred_element_type=F32)
         + jnp.dot(xp[1:l + 1], w1_ref[...], preferred_element_type=F32)
         + jnp.dot(xp[2:l + 2], w2_ref[...], preferred_element_type=F32)
         + b_ref[...])
    # BatchNorm1d eval (running stats) + ELU(alpha=1).
    y = (y - m_ref[...]) * jax.lax.rsqrt(v_ref[...] + 1e-5) * g_ref[...] + e_ref[...]
    # expm1(y) == tanh(y/2) * (exp(y) + 1): exact identity, precise near 0,
    # uses only transcendentals guaranteed to lower on TPU (EUP tanh/exp).
    elu_neg = jnp.tanh(0.5 * y) * (jnp.exp(y) + 1.0)
    z = jnp.where(y > 0, y, elu_neg)

    # MaxPool1d(3, 2, 1): out[t] = max(z[2t-1], z[2t], z[2t+1]) with edge pad.
    l_out = o_ref.shape[1]
    r = jax.lax.broadcasted_iota(jnp.int32, (l_out, l), 0)
    col = jax.lax.broadcasted_iota(jnp.int32, (l_out, l), 1)
    sel_prev = (col == 2 * r - 1).astype(F32)
    sel_mid = (col == 2 * r).astype(F32)
    sel_next = (col == 2 * r + 1).astype(F32)
    rr = jax.lax.broadcasted_iota(jnp.int32, (l_out, c), 0)
    neg = jnp.float32(-1e30)
    w_prev = jnp.where(2 * rr - 1 < 0, neg,
                       jnp.dot(sel_prev, z, preferred_element_type=F32))
    w_mid = jnp.dot(sel_mid, z, preferred_element_type=F32)
    w_next = jnp.where(2 * rr + 1 >= l, neg,
                       jnp.dot(sel_next, z, preferred_element_type=F32))
    o_ref[0] = jnp.maximum(jnp.maximum(w_prev, w_mid), w_next).astype(o_ref.dtype)


def pallas_distil_conv(xp, p, l_out):
    bsz, lp2, c = xp.shape
    return pl.pallas_call(
        _distil_kernel,
        grid=(bsz,),
        in_specs=[pl.BlockSpec((1, lp2, c), lambda i: (i, 0, 0))]
        + [pl.BlockSpec((c, c), lambda i: (0, 0))] * 3
        + [pl.BlockSpec((1, c), lambda i: (0, 0))] * 5,
        out_specs=pl.BlockSpec((1, l_out, c), lambda i: (i, 0, 0)),
        out_shape=jax.ShapeDtypeStruct((bsz, l_out, c), F32),
        compiler_params=pltpu.CompilerParams(dimension_semantics=("parallel",)),
    )(xp, p["w_conv0"], p["w_conv1"], p["w_conv2"], p["b_conv"],
      p["bn_g"], p["bn_b"], p["bn_m"], p["bn_v"])


# ----------------------------------------------------------------------------
# JAX glue (reshapes, gathers, parameter setup)
# ----------------------------------------------------------------------------
def apply_linear(x, w, b, act=None):
    lead = x.shape[:-1]
    y = pallas_linear(x.reshape(-1, x.shape[-1]), w, b, act)
    return y.reshape(*lead, w.shape[1])


def _circular_pad(x):
    # (B, L, C) -> (B, L+2, C): one row of circular padding each side.
    return jnp.concatenate([x[:, -1:], x, x[:, :1]], axis=1)


def _sinusoidal_table(n_pos, d_model):
    pos = jnp.arange(n_pos, dtype=F32)[:, None]
    div = jnp.exp(jnp.arange(0, d_model, 2, dtype=F32)
                  * -(math.log(10000.0) / d_model))
    tab = jnp.zeros((n_pos, d_model), F32)
    tab = tab.at[:, 0::2].set(jnp.sin(pos * div))
    tab = tab.at[:, 1::2].set(jnp.cos(pos * div))
    return tab


def data_embedding(p, x, x_mark, tables):
    # TokenEmbedding (circular conv) + PositionalEmbedding + fixed
    # TemporalEmbedding (sinusoidal lookups); dropout p=0 -> identity.
    _, l, _ = x.shape
    xm = x_mark.astype(jnp.int32)
    pe_temp = (tables["pe"][None, :l]
               + jnp.take(tables["month"], xm[..., 0], axis=0)
               + jnp.take(tables["day"], xm[..., 1], axis=0)
               + jnp.take(tables["weekday"], xm[..., 2], axis=0)
               + jnp.take(tables["hour"], xm[..., 3], axis=0))
    return pallas_embed(_circular_pad(x), pe_temp,
                        p["w_token0"], p["w_token1"], p["w_token2"], p["b_token"])


def self_attention(p, x, n_heads, *, causal, mix):
    b, l, d = x.shape
    qkv = apply_linear(x, p["w_qkv"], p["b_qkv"])         # (B, L, 3D), scale folded
    q, k, v = qkv[..., :d], qkv[..., d:2 * d], qkv[..., 2 * d:]
    o = pallas_attention(q, k, v, n_heads=n_heads, causal=causal)   # (B, L, H*Dv)
    if mix:
        # torch: (B,L,H,D) -> transpose(2,1) -> contiguous -> view(B,L,H*D)
        dv = d // n_heads
        o = o.reshape(b, l, n_heads, dv).transpose(0, 2, 1, 3).reshape(b, l, d)
    return o


def cross_attention(p, x, cross, n_heads):
    d = x.shape[-1]
    q = apply_linear(x, p["w_q"], p["b_q"])               # scale folded into w_q
    kv = apply_linear(cross, p["w_kv"], p["b_kv"])        # (B, S, 2D)
    k, v = kv[..., :d], kv[..., d:]
    return pallas_attention(q, k, v, n_heads=n_heads, causal=False)


def encoder_layer(p, x, n_heads):
    b, l, d = x.shape
    x2 = x.reshape(-1, d)
    o = self_attention(p["attn"], x, n_heads, causal=False, mix=False).reshape(-1, d)
    x1 = pallas_linear_res_ln(o, p["attn"]["wo"], p["attn"]["bo"],
                              x2, p["ln1_g"], p["ln1_b"])
    h = pallas_linear(x1, p["w1"], p["b1"], act="gelu")
    y = pallas_linear_res_ln(h, p["w2"], p["b2"], x1, p["ln2_g"], p["ln2_b"])
    return y.reshape(b, l, d)


def distil_conv_layer(p, x):
    _, l, _ = x.shape
    l_out = (l - 1) // 2 + 1
    return pallas_distil_conv(_circular_pad(x), p, l_out)


def decoder_layer(p, x, cross, n_heads):
    b, l, d = x.shape
    x2 = x.reshape(-1, d)
    o = self_attention(p["self_attn"], x, n_heads, causal=True, mix=True).reshape(-1, d)
    x1 = pallas_linear_res_ln(o, p["self_attn"]["wo"], p["self_attn"]["bo"],
                              x2, p["ln1_g"], p["ln1_b"])
    oc = cross_attention(p["cross_attn"], x1.reshape(b, l, d), cross,
                         n_heads).reshape(-1, d)
    xc = pallas_linear_res_ln(oc, p["cross_attn"]["wo"], p["cross_attn"]["bo"],
                              x1, p["ln2_g"], p["ln2_b"])
    h = pallas_linear(xc, p["w1"], p["b1"], act="gelu")
    y = pallas_linear_res_ln(h, p["w2"], p["b2"], xc, p["ln3_g"], p["ln3_b"])
    return y.reshape(b, l, d)


def informer_forward(params, cfg, x_enc, x_mark_enc, x_dec, x_mark_dec):
    nh = cfg["n_heads"]
    dm = cfg["d_model"]
    # encoder
    enc = data_embedding(params["enc_emb"], x_enc, x_mark_enc, params["tables"])
    for i in range(cfg["e_layers"] - 1):
        enc = encoder_layer(params["enc_layers"][i], enc, nh)
        enc = distil_conv_layer(params["enc_convs"][i], enc)
    enc = encoder_layer(params["enc_layers"][-1], enc, nh)
    be, le, _ = enc.shape
    enc = pallas_layernorm(enc.reshape(-1, dm), params["enc_norm"][0],
                           params["enc_norm"][1]).reshape(be, le, dm)
    # decoder
    dec = data_embedding(params["dec_emb"], x_dec, x_mark_dec, params["tables"])
    for i in range(cfg["d_layers"]):
        dec = decoder_layer(params["dec_layers"][i], dec, enc, nh)
    bd, ld, _ = dec.shape
    dec2 = pallas_layernorm(dec.reshape(-1, dm), params["dec_norm"][0],
                            params["dec_norm"][1])
    out = pallas_linear(dec2, params["proj_w"], params["proj_b"]).reshape(bd, ld, -1)
    return out[:, -cfg["pred_len"]:, :]


# ----------------------------------------------------------------------------
# Deterministic parameter initialization
# ----------------------------------------------------------------------------
def init_params(key, cfg):
    d_model, d_ff, nh = cfg["d_model"], cfg["d_ff"], cfg["n_heads"]
    enc_in, dec_in, c_out = cfg["enc_in"], cfg["dec_in"], cfg["c_out"]
    dk = d_model // nh
    attn_scale = 1.0 / math.sqrt(dk)
    ks = iter(jax.random.split(key, 512))

    def w_init(d_in, d_out, scale=0.1):
        return jax.random.normal(next(ks), (d_in, d_out), F32) * scale

    def zeros_b(d_out):
        return jnp.zeros((1, d_out), F32)

    def ln():
        return jnp.ones((1, d_model), F32), jnp.zeros((1, d_model), F32)

    def self_attn_params():
        wq, wk, wv = (w_init(d_model, d_model) for _ in range(3))
        bq, bk, bv = zeros_b(d_model), zeros_b(d_model), zeros_b(d_model)
        # fold 1/sqrt(E) softmax scale into the query projection
        return dict(
            w_qkv=jnp.concatenate([wq * attn_scale, wk, wv], axis=1).astype(BF16),
            b_qkv=jnp.concatenate([bq * attn_scale, bk, bv], axis=1),
            wo=w_init(d_model, d_model).astype(BF16), bo=zeros_b(d_model))

    def cross_attn_params():
        wq, wk, wv = (w_init(d_model, d_model) for _ in range(3))
        return dict(
            w_q=(wq * attn_scale).astype(BF16), b_q=zeros_b(d_model),
            w_kv=jnp.concatenate([wk, wv], axis=1).astype(BF16),
            b_kv=zeros_b(2 * d_model),
            wo=w_init(d_model, d_model).astype(BF16), bo=zeros_b(d_model))

    def ffn_params():
        return dict(w1=w_init(d_model, d_ff).astype(BF16), b1=zeros_b(d_ff),
                    w2=w_init(d_ff, d_model).astype(BF16), b2=zeros_b(d_model))

    def enc_layer():
        g1, e1 = ln(); g2, e2 = ln()
        return dict(attn=self_attn_params(), **ffn_params(),
                    ln1_g=g1, ln1_b=e1, ln2_g=g2, ln2_b=e2)

    def dec_layer():
        g1, e1 = ln(); g2, e2 = ln(); g3, e3 = ln()
        return dict(self_attn=self_attn_params(), cross_attn=cross_attn_params(),
                    **ffn_params(),
                    ln1_g=g1, ln1_b=e1, ln2_g=g2, ln2_b=e2, ln3_g=g3, ln3_b=e3)

    def conv_layer_params():
        return dict(w_conv0=w_init(d_model, d_model),
                    w_conv1=w_init(d_model, d_model),
                    w_conv2=w_init(d_model, d_model),
                    b_conv=zeros_b(d_model),
                    bn_g=jnp.ones((1, d_model), F32),
                    bn_b=jnp.zeros((1, d_model), F32),
                    bn_m=jnp.zeros((1, d_model), F32),
                    bn_v=jnp.ones((1, d_model), F32))

    def embedding_params(c_in):
        return dict(w_token0=w_init(c_in, d_model),
                    w_token1=w_init(c_in, d_model),
                    w_token2=w_init(c_in, d_model),
                    b_token=zeros_b(d_model))

    tables = dict(pe=_sinusoidal_table(512, d_model),
                  month=_sinusoidal_table(13, d_model),
                  day=_sinusoidal_table(32, d_model),
                  weekday=_sinusoidal_table(7, d_model),
                  hour=_sinusoidal_table(24, d_model))

    return dict(enc_emb=embedding_params(enc_in),
                dec_emb=embedding_params(dec_in),
                tables=tables,
                enc_layers=[enc_layer() for _ in range(cfg["e_layers"])],
                enc_convs=[conv_layer_params() for _ in range(cfg["e_layers"] - 1)],
                enc_norm=ln(),
                dec_layers=[dec_layer() for _ in range(cfg["d_layers"])],
                dec_norm=ln(),
                proj_w=w_init(d_model, c_out).astype(BF16),
                proj_b=zeros_b(c_out))


# ----------------------------------------------------------------------------
if __name__ == "__main__":
    cfg = dict(enc_in=4, dec_in=4, c_out=2, pred_len=4,
               d_model=16, n_heads=4, e_layers=2, d_layers=1, d_ff=64)

    key = jax.random.PRNGKey(0)
    kp, k1, k2, k3, k4 = jax.random.split(key, 5)
    params = init_params(kp, cfg)

    B, seq_len, label_len = 2, 16, 4
    dec_len = label_len + cfg["pred_len"]

    x_enc = jax.random.normal(k1, (B, seq_len, cfg["enc_in"]), F32)
    x_dec = jax.random.normal(k2, (B, dec_len, cfg["dec_in"]), F32)

    def rand_marks(k, L):
        km, kd, kw, kh = jax.random.split(k, 4)
        return jnp.stack([jax.random.randint(km, (B, L), 1, 13),   # month
                          jax.random.randint(kd, (B, L), 1, 32),   # day
                          jax.random.randint(kw, (B, L), 0, 7),    # weekday
                          jax.random.randint(kh, (B, L), 0, 24),   # hour
                          ], axis=-1).astype(F32)

    x_mark_enc = rand_marks(k3, seq_len)
    x_mark_dec = rand_marks(k4, dec_len)

    out = informer_forward(params, cfg, x_enc, x_mark_enc, x_dec, x_mark_dec)
    out = jax.block_until_ready(out)
    assert out.shape == (B, cfg["pred_len"], cfg["c_out"]), out.shape
    assert bool(jnp.all(jnp.isfinite(out)))
    print("KERNEL_OK")
</pallas_src>

<mosaic_0001>
module attributes {stable_mosaic.version = 11 : i64} {
  func.func @_embed_kernel(%arg0: i32, %arg1: memref<1x18x4xf32, #tpu.memory_space<vmem>>, %arg2: memref<1x16x16xf32, #tpu.memory_space<vmem>>, %arg3: memref<4x16xf32, #tpu.memory_space<vmem>>, %arg4: memref<4x16xf32, #tpu.memory_space<vmem>>, %arg5: memref<4x16xf32, #tpu.memory_space<vmem>>, %arg6: memref<1x16xf32, #tpu.memory_space<vmem>>, %arg7: memref<1x16x16xf32, #tpu.memory_space<vmem>>) attributes {dimension_semantics = [#tpu.dimension_semantics<parallel>], iteration_bounds = array<i64: 2>, scalar_prefetch = 0 : i64, scratch_operands = 0 : i64, tpu.core_type = #tpu.core_type<tc>, window_params = [{transform_indices = @transform_0, window_bounds = array<i64: 1, 18, 4>}, {transform_indices = @transform_1, window_bounds = array<i64: 1, 16, 16>}, {pipeline_mode = #tpu.pipeline_mode<synchronous>, transform_indices = @transform_2, window_bounds = array<i64: 4, 16>}, {pipeline_mode = #tpu.pipeline_mode<synchronous>, transform_indices = @transform_3, window_bounds = array<i64: 4, 16>}, {pipeline_mode = #tpu.pipeline_mode<synchronous>, transform_indices = @transform_4, window_bounds = array<i64: 4, 16>}, {pipeline_mode = #tpu.pipeline_mode<synchronous>, transform_indices = @transform_5, window_bounds = array<i64: 1, 16>}, {transform_indices = @transform_6, window_bounds = array<i64: 1, 16, 16>}]} {
    %c0 = arith.constant 0 : index
    %c0_0 = arith.constant 0 : index
    %c0_1 = arith.constant 0 : index
    %0 = vector.load %arg1[%c0, %c0_0, %c0_1] : memref<1x18x4xf32, #tpu.memory_space<vmem>>, vector<1x18x4xf32>
    %1 = vector.shape_cast %0 : vector<1x18x4xf32> to vector<18x4xf32>
    %2 = vector.extract_strided_slice %1 {offsets = [0, 0], sizes = [16, 4], strides = [1, 1]} : vector<18x4xf32> to vector<16x4xf32>
    %c0_2 = arith.constant 0 : index
    %c0_3 = arith.constant 0 : index
    %3 = vector.load %arg3[%c0_2, %c0_3] : memref<4x16xf32, #tpu.memory_space<vmem>>, vector<4x16xf32>
    %cst = arith.constant dense<0.000000e+00> : vector<16x16xf32>
    %4 = tpu.matmul %2, %3, %cst {dimension_numbers = #tpu.dot_dimension_numbers<[1], [0], [0], [1], [0, 0, 1, 1], [], []>} : vector<16x4xf32>, vector<4x16xf32>, vector<16x16xf32> -> vector<16x16xf32>
    %5 = vector.extract_strided_slice %1 {offsets = [1, 0], sizes = [16, 4], strides = [1, 1]} : vector<18x4xf32> to vector<16x4xf32>
    %c0_4 = arith.constant 0 : index
    %c0_5 = arith.constant 0 : index
    %6 = vector.load %arg4[%c0_4, %c0_5] : memref<4x16xf32, #tpu.memory_space<vmem>>, vector<4x16xf32>
    %cst_6 = arith.constant dense<0.000000e+00> : vector<16x16xf32>
    %7 = tpu.matmul %5, %6, %cst_6 {dimension_numbers = #tpu.dot_dimension_numbers<[1], [0], [0], [1], [0, 0, 1, 1], [], []>} : vector<16x4xf32>, vector<4x16xf32>, vector<16x16xf32> -> vector<16x16xf32>
    %8 = arith.addf %4, %7 : vector<16x16xf32>
    %9 = vector.extract_strided_slice %1 {offsets = [2, 0], sizes = [16, 4], strides = [1, 1]} : vector<18x4xf32> to vector<16x4xf32>
    %c0_7 = arith.constant 0 : index
    %c0_8 = arith.constant 0 : index
    %10 = vector.load %arg5[%c0_7, %c0_8] : memref<4x16xf32, #tpu.memory_space<vmem>>, vector<4x16xf32>
    %cst_9 = arith.constant dense<0.000000e+00> : vector<16x16xf32>
    %11 = tpu.matmul %9, %10, %cst_9 {dimension_numbers = #tpu.dot_dimension_numbers<[1], [0], [0], [1], [0, 0, 1, 1], [], []>} : vector<16x4xf32>, vector<4x16xf32>, vector<16x16xf32> -> vector<16x16xf32>
    %12 = arith.addf %8, %11 : vector<16x16xf32>
    %c0_10 = arith.constant 0 : index
    %c0_11 = arith.constant 0 : index
    %13 = vector.load %arg6[%c0_10, %c0_11] : memref<1x16xf32, #tpu.memory_space<vmem>>, vector<1x16xf32>
    %14 = vector.broadcast %13 : vector<1x16xf32> to vector<16x16xf32>
    %15 = arith.addf %12, %14 : vector<16x16xf32>
    %c0_12 = arith.constant 0 : index
    %c0_13 = arith.constant 0 : index
    %c0_14 = arith.constant 0 : index
    %16 = vector.load %arg2[%c0_12, %c0_13, %c0_14] : memref<1x16x16xf32, #tpu.memory_space<vmem>>, vector<1x16x16xf32>
    %17 = vector.shape_cast %16 : vector<1x16x16xf32> to vector<16x16xf32>
    %18 = arith.addf %15, %17 : vector<16x16xf32>
    %c0_15 = arith.constant 0 : index
    %c0_16 = arith.constant 0 : index
    %c0_17 = arith.constant 0 : index
    %19 = vector.load %arg7[%c0_15, %c0_16, %c0_17] : memref<1x16x16xf32, #tpu.memory_space<vmem>>, vector<1x16x16xf32>
    %20 = vector.shape_cast %19 : vector<1x16x16xf32> to vector<16x16xf32>
    %21 = vector.shape_cast %18 : vector<16x16xf32> to vector<1x16x16xf32>
    tpu.vector_store %arg7[%c0_15, %c0_16, %c0_17], %21 {strides = array<i32>} : memref<1x16x16xf32, #tpu.memory_space<vmem>>, vector<1x16x16xf32>,
    return
  }
  func.func @transform_0(%arg0: i32) -> (i32, i32, i32) {
    %c0_i32 = arith.constant 0 : i32
    %c0_i32_0 = arith.constant 0 : i32
    %c0_i32_1 = arith.constant 0 : i32
    return %arg0, %c0_i32, %c0_i32_0 : i32, i32, i32
  }
  func.func @transform_1(%arg0: i32) -> (i32, i32, i32) {
    %c0_i32 = arith.constant 0 : i32
    %c0_i32_0 = arith.constant 0 : i32
    %c0_i32_1 = arith.constant 0 : i32
    return %arg0, %c0_i32, %c0_i32_0 : i32, i32, i32
  }
  func.func @transform_2(%arg0: i32) -> (i32, i32) {
    %c0_i32 = arith.constant 0 : i32
    %c0_i32_0 = arith.constant 0 : i32
    %c0_i32_1 = arith.constant 0 : i32
    return %c0_i32, %c0_i32_0 : i32, i32
  }
  func.func @transform_3(%arg0: i32) -> (i32, i32) {
    %c0_i32 = arith.constant 0 : i32
    %c0_i32_0 = arith.constant 0 : i32
    %c0_i32_1 = arith.constant 0 : i32
    return %c0_i32, %c0_i32_0 : i32, i32
  }
  func.func @transform_4(%arg0: i32) -> (i32, i32) {
    %c0_i32 = arith.constant 0 : i32
    %c0_i32_0 = arith.constant 0 : i32
    %c0_i32_1 = arith.constant 0 : i32
    return %c0_i32, %c0_i32_0 : i32, i32
  }
  func.func @transform_5(%arg0: i32) -> (i32, i32) {
    %c0_i32 = arith.constant 0 : i32
    %c0_i32_0 = arith.constant 0 : i32
    %c0_i32_1 = arith.constant 0 : i32
    return %c0_i32, %c0_i32_0 : i32, i32
  }
  func.func @transform_6(%arg0: i32) -> (i32, i32, i32) {
    %c0_i32 = arith.constant 0 : i32
    %c0_i32_0 = arith.constant 0 : i32
    %c0_i32_1 = arith.constant 0 : i32
    return %arg0, %c0_i32, %c0_i32_0 : i32, i32, i32
  }
}

</mosaic_0001>

<bundles_post_ra>
// kernel: tpu_custom_call.1
= control target key start
LH: loop header
LB: loop body
LE: loop exit
PB: predicated region body
PF: predicated region fallthrough
CT: control target
= control target key end

     0   :  { %11 = vsyncpa [#allocation3], 0  ;;  %s969_s0 = inlined_call_operand.vmem [shape: f32[2,18,4], index: 0, kind: input, shape index: {}]   ;;  %s970_s1 = inlined_call_operand.vmem [shape: f32[2,16,16], index: 1, kind: input, shape index: {}]   ;;  %s971_s2 = inlined_call_operand.vmem [shape: f32[4,16], index: 2, kind: input, shape index: {}]   ;;  %s972_s3 = inlined_call_operand.vmem [shape: f32[4,16], index: 3, kind: input, shape index: {}]   ;;  %s973_s4 = inlined_call_operand.vmem [shape: f32[4,16], index: 4, kind: input, shape index: {}]   ;;  %s974_s5 = inlined_call_operand.vmem [shape: f32[1,16], index: 5, kind: input, shape index: {}]   ;;  %s975_s6 = inlined_call_operand.hbm [shape: f32[2,16,16], index: 6, kind: output, shape index: {}]  }
   0x1   :  { %13 = vsyncpa [#allocation3 + $0x1], 0  ;;  %s836_s21 = smov 0   ;;  %s838_s22 = smov 0  }
   0x2   :  { %s840_s23 = smov 0   ;;  %s842_s24 = smov 0  }
   0x3 LB: > { %s857_s25 = sadd.s32 4294967295, %s796_s24   ;;  %s645_s26 = sadd.s32 4294967294, %s796_s24   ;;  %s796_s24 = sphi %s842_s24, %s981_s24   ;;  %s792_s23 = sphi %s840_s23, %s980_s23   ;;  %s788_s22 = sphi %s838_s22, %s979_s22   ;;  %s784_s21 = sphi %s836_s21, %s978_s21  }
   0x4   : > { %s861_s27 = sadd.s32 1, %s796_s24   ;;  %s162_s28 = sadd.s32 1, %s792_s23 }
   0x5   : > { %s159_s29 = ssub.s32 %s796_s24, %s861_s27  ;;  %p172_p0 = scmp.ne.s32.totalorder %s792_s23, %s788_s22 }
   0x6   : > { %p160_p1 = scmp.eq.s32.totalorder %s159_s29, 0  ;;  %p173_p2 = scmp.eq.s32.totalorder %s857_s25, 1 }
   0x7   : > { %p178_p3 = scmp.ne.s32.totalorder %s788_s22, %s784_s21  ;;  %p179_p4 = scmp.eq.s32.totalorder %s645_s26, 1 }
   0x8   : > { %s872_s30 = scalar_select %p160_p1, %s792_s23, %s162_s28  }
   0x9   : > { %p874_p5 = por %p173_p2, %p172_p0  ;;  %p878_p6 = por %p179_p4, %p178_p3 }
   0xa   : > { %p648_p7 = scmp.ge.s32.totalorder %s796_s24, 1  ;;  %p225_p8 = scmp.lt.s32.totalorder %s796_s24, 3 }
   0xc   : > { %p226_p9 = pnand %p648_p7, %p225_p8 }
   0xd   : > { %p260_p10 = scmp.lt.s32.totalorder (!%p226_p9), %s857_s25, 1  ;;  %s257_s20 = sand.u32 (!%p226_p9), 1, %s788_s22  }
   0xe   : > { %229 = sbr.rel (%p226_p9) target bundleno = 248 (0xf8), region = 44  ;;  %s649_s28 = sshll.u32 (!%p226_p9), %s257_s20, 4 }
   0xf   : > { %s669_s13 = sshll.u32 (!%p226_p9), %s857_s25, 8  ;;  %s259_s14 = scalar_lea.vmem (!%p226_p9), [#allocation2], %s649_s28 }
  0x10   : > { %s925_s18 = scalar_lea.hbm (!%p226_p9), %s975_s6, %s669_s13 }
  0x13   : > { %v274_v0 = vld [vmem:[%s972_s3] sm:$0xf]  ;;  %vm289_vm0 = vcmask 1043456   ;;  %s898_s15 = scalar_select %p260_p10, %s857_s25, 1  ;;  %vm284_vm1 = vcmask 31744   ;;  %vm278_vm2 = vcmask 1046528  }
  0x14   : > { %v273_v1 = vld [vmem:[%s971_s2] sm:$0xf]  ;;  %679 = vmatprep.subr.msk.mxu0 %vm289_vm0, %v274_v0  ;;  %vm451_vm3 = vcmask 1045504   ;;  %vm554_vm4 = vcmask 130048   ;;  %s929_s25 = scalar_lea.sflag [#allocation3], %s257_s20 }
  0x15   : > { %684 = vmatprep.subr.msk.mxu1 %vm289_vm0, %v273_v1  ;;  %v450_v2 = vld [vmem:[%s973_s4] sm:$0xf]  ;;  %680 = vmatpush3.msk.msra.mxu0 %vm289_vm0, %v274_v0  ;;  %s694_s16 = smul.u32 24, %s898_s15  ;;  %s668_s26 = sshll.u32 %s898_s15, 4 }
  0x16   : > { %685 = vmatpush3.msk.msra.mxu1 %vm289_vm0, %v273_v1  ;;  %689 = vmatprep.subr.msk.mxu0 %vm289_vm0, %v450_v2  ;;  %s269_s10 = scalar_lea.vmem %s970_s1, %s668_s26  ;;  %v662_v22 = vld [vmem:[%s974_s5] ss:$0 sm:$0xff]  ;;  %s571_s15 = sshll.u32 %s259_s14, 4  ;;  %s927_s15 = int_to_ptr.vmem [resolvable:$true] %s571_s15 }
  0x17   : > { %s264_s19 = scalar_lea.vmem %s969_s0, %s694_s16  ;;  %v551_v25 = vld [vmem:[%s269_s10 + $0x8] sm:$0xff]  ;;  %v550_v29 = vld [vmem:[%s269_s10] sm:$0xff]  ;;  %s798_s26 = smov [#allocation2]  }
  0x18   : > { %v270_v3 = vld [vmem:[%s264_s19] sm:$0xff]  ;;  %v271_v4 = vld [vmem:[%s264_s19 + $0x8] sm:$0xff]  ;;  %v272_v5 = vld [vmem:[%s264_s19 + $0x10] sm:$0x3]  ;;  %s736_s19 = scalar_lea.vmem %s927_s15, 256  ;;  %s740_s28 = sshll.u32 %s798_s26, 4  ;;  %s741_s28 = int_to_ptr.vmem [resolvable:$false] %s740_s28 }
  0x19   : > { %v279_v6 = vrot.slane %v270_v3, 1  ;;  %v280_v7 = vrot.slane %v271_v4, 1  ;;  %686 = vmatprep.mubr.msk.f32.mxu1 %vm284_vm1, %v270_v3  ;;  %v282_v8 = vrot.slane %v272_v5, 1  ;;  %v455_v9 = vrot.slane %v272_v5, 2  ;;  %p737_p11 = scmp.ne.s32.totalorder %s927_s15, %s736_s19  ;;  %s742_s29 = scalar_lea.vmem %s741_s28, 512 }
  0x1a   : > { %687 = vmatmul.mubr.msk.f32.vlgmr.msra.gmra.mxu1 %vm284_vm1, %v271_v4  ;;  %v452_v10 = vrot.slane %v270_v3, 2  ;;  %v453_v11 = vrot.slane %v271_v4, 2  ;;  %p743_p0 = scmp.lt.s32.totalorder %s927_s15, %s741_s28  ;;  %p744_p1 = scmp.lt.s32.totalorder %s742_s29, %s736_s19 }
  0x1b   : > { %v281_v12 = vsel %vm278_vm2, %v279_v6, %v280_v7  ;;  %v283_v13 = vsel %vm278_vm2, %v280_v7, %v282_v8  ;;  %p738_p12 = pnand %p737_p11, %p874_p5 }
  0x1c   : > { %681 = vmatprep.mubr.msk.f32.mxu0 %vm284_vm1, %v281_v12  ;;  %v454_v14 = vsel %vm451_vm3, %v452_v10, %v453_v11  ;;  %v456_v15 = vsel %vm451_vm3, %v453_v11, %v455_v9  ;;  %p745_p2 = por %p744_p1, %p743_p0 }
  0x1d   : > { %682 = vmatmul.mubr.msk.f32.vlgmr.msra.gmra.mxu0 %vm284_vm1, %v283_v13  ;;  %p739_p13 = pneg %p738_p12 }
  0x1e   : > { %690 = vmatpush3.msk.msra.mxu0 %vm289_vm0, %v450_v2  ;;  %691 = vmatprep.mubr.msk.f32.mxu0 %vm284_vm1, %v454_v14 }
  0x1f   : > { %p746_p3 = pnand %p745_p2, %p739_p13 }
  0x21   : > { %692 = vmatmul.mubr.msk.f32.vlgmr.msra.gmra.mxu0 %vm284_vm1, %v456_v15 }
  0xda   : > { %v688_v16 = vpop.f32.mrf.mxu1 }
  0xdc   : > { %v441_v19 = vpop.f32.mrf.mxu1 }
  0xdd   : > { %v683_v17 = vpop.f32.mrf.mxu0 }
  0xde   : > { %v447_v20 = vadd.f32 %v688_v16, %v683_v17 }
  0xdf   : > { %v359_v18 = vpop.f32.mrf.mxu0 }
  0xe0   : > { %v442_v23 = vadd.f32 %v441_v19, %v359_v18 }
  0xe1   : > { %v693_v21 = vpop.f32.mrf.mxu0 }
  0xe2   : > { %v540_v24 = vadd.f32 %v693_v21, %v447_v20 }
  0xe3   : > { %v530_v26 = vpop.f32.mrf.mxu0 }
  0xe4   : > { %v549_v27 = vadd.f32 %v662_v22, %v540_v24  ;;  %v539_v28 = vadd.f32 %v530_v26, %v442_v23 }
  0xe6   : > { %v553_v30 = vadd.f32 %v551_v25, %v549_v27  ;;  %v548_v31 = vadd.f32 %v662_v22, %v539_v28 }
  0xe8   : > { %556 = vst.msk [vmem:[%s259_s14 + $0x8] sm:$0xff] %vm554_vm4, %v553_v30  ;;  %v552_v32 = vadd.f32 %v550_v29, %v548_v31 }
  0xea   : > { %555 = vst.msk [vmem:[%s259_s14] sm:$0xff] %vm554_vm4, %v552_v32 }
  0xeb   : > { %749 = shalt.err (!%p746_p3)
}
  0xec   : > { %s750_s20 = scalar_lea.hbm %s925_s18, 256  ;;  %s754_s11 = scalar_lea.hbm %s975_s6, 512 }
  0xed   : > { %p751_p4 = scmp.ne.s32.totalorder %s925_s18, %s750_s20  ;;  %p755_p9 = scmp.lt.s32.totalorder %s925_s18, %s975_s6 }
  0xee   : > { %p756_p10 = scmp.lt.s32.totalorder %s754_s11, %s750_s20 }
  0xef   : > { %p752_p7 = pnand %p751_p4, %p874_p5 }
  0xf0   : > { %p757_p11 = por %p756_p10, %p755_p9 }
  0xf1   : > { %p753_p8 = pneg %p752_p7 }
  0xf3   : > { %p758_p12 = pnand %p757_p11, %p753_p8 }
  0xf5   : > { %761 = shalt.err (!%p758_p12)
}
  0xf6   : > { %s799_s14 = smov 128   ;;  %s800_s16 = smov 8  }
  0xf7   : > { %695 = dma.vmem_to_hbm [thread:$0]  (%p874_p5), %s927_s15, 256, %s925_s18, %s929_s25, %s799_s14, %s799_s14, %s800_s16  }
  0xf8 PF: > { %p701_p13 = scmp.ge.s32.totalorder %s796_s24, 2  ;;  %s586_s17 = sand.u32 1, %s784_s21  }
  0xf9   : > { %s587_s19 = scalar_lea.sflag [#allocation3], %s586_s17 }
  0xfa   : > { %p698_p0 = pnand %p701_p13, %p878_p6 }
  0xfc   : > { %p699_p1 = pneg %p698_p0 }
  0xfe   : > { %779 = dma.done.wait (%p699_p1), %s587_s19, 256  }
  0xff   : > { %781 = vsyncadd (%p699_p1), %s587_s19, 4294967040  ;;  %p16_p2 = scmp.ge.s32.totalorder %s861_s27, 4   ;;  %s978_s21 = smov %s788_s22 }
 0x100   : > { %s979_s22 = smov %s792_s23  ;;  %s980_s23 = smov %s872_s30 }
 0x101   : > { %s981_s24 = smov %s861_s27  ;;  %18 = sbr.rel (!%p16_p2) target bundleno = 3 (0x3), region = 82 }
 0x106   :  { %592 = vsyncpa [#allocation3], 1 }
 0x107   :  { %594 = vsyncpa [#allocation3 + $0x1], 1 }

</bundles_post_ra>
